<compile_context>
chip_gen: v6e
topology: v6e:2x2x1
jax: 0.10.0
libtpu: 0.0.40
codegen_flags: <defaults>
</compile_context>

<pallas_src>
import functools

import jax
import jax.numpy as jnp
from jax.experimental import pallas as pl
from jax.experimental.pallas import tpu as pltpu


def _neg_pearson_kernel(x_ref, y_ref, out_ref,
                        acc_x, acc_y, acc_xy, acc_x2, acc_y2,
                        *, n_true, tile_n):
    """Grid = (row_tiles, time_tiles); the time axis (axis 1) is the reduction."""
    k = pl.program_id(1)

    # ---- init accumulators at the start of each row block's time loop ------
    @pl.when(k == 0)
    def _():
        zero = jnp.zeros_like(acc_x)
        acc_x[...] = zero
        acc_y[...] = zero
        acc_xy[...] = zero
        acc_x2[...] = zero
        acc_y2[...] = zero

    # ---- accumulate the five statistics with pure VPU adds -----------------
    # The time tile is consumed in 128-lane columns so the running sums stay
    # (tile_r, 128)-shaped; the cross-lane XLU reduce happens only once, at
    # finalization, keeping the hot loop HBM-bound rather than XLU-bound.
    px, py = acc_x[...], acc_y[...]
    pxy, px2, py2 = acc_xy[...], acc_x2[...], acc_y2[...]
    for c in range(tile_n // 128):
        xc = x_ref[:, c * 128:(c + 1) * 128].astype(jnp.float32)
        yc = y_ref[:, c * 128:(c + 1) * 128].astype(jnp.float32)
        px = px + xc
        py = py + yc
        pxy = pxy + xc * yc
        px2 = px2 + xc * xc
        py2 = py2 + yc * yc
    acc_x[...], acc_y[...] = px, py
    acc_xy[...], acc_x2[...], acc_y2[...] = pxy, px2, py2

    # ---- finalize on the last time tile -------------------------------------
    @pl.when(k == pl.num_programs(1) - 1)
    def _():
        n = jnp.float32(n_true)
        sum_x = jnp.sum(acc_x[...], axis=-1, keepdims=True)    # (tile_r, 1)
        sum_y = jnp.sum(acc_y[...], axis=-1, keepdims=True)
        sum_xy = jnp.sum(acc_xy[...], axis=-1, keepdims=True)
        sum_x2 = jnp.sum(acc_x2[...], axis=-1, keepdims=True)
        sum_y2 = jnp.sum(acc_y2[...], axis=-1, keepdims=True)

        num = n * sum_xy - sum_x * sum_y
        den = jnp.sqrt((n * sum_x2 - sum_x * sum_x) *
                       (n * sum_y2 - sum_y * sum_y))
        # NOTE: den == 0 (constant signal) yields NaN, matching naive PyTorch.
        p = num / den
        p2 = p * p
        contrib = jnp.where(p >= 0.0, 1.0 - p2, 1.0 + p2)       # (tile_r, 1)
        out_ref[...] = jnp.broadcast_to(contrib, out_ref.shape)


def _pick_row_tile(rows):
    # Largest divisor of `rows` that is a multiple of 8 (full sublanes), capped
    # at 32 to keep vreg pressure low; otherwise the full extent (always legal).
    best = None
    d = 8
    while d <= min(rows, 32):
        if rows % d == 0:
            best = d
        d += 8
    return best if best is not None else rows


def _pick_time_tile(n_pad, tile_r, itemsize):
    # Tile the (padded) time axis in multiples of 128 lanes.  Budget ~2 MiB per
    # input tile so 2 inputs x 2 pipeline buffers stays far below the scoped
    # VMEM limits on every generation (16/32/32 MiB defaults on v5e/v6e/v7x).
    n_units = n_pad // 128
    budget_units = max(1, (2 * 1024 * 1024) // (tile_r * 128 * itemsize))
    cap = min(n_units, budget_units, 16)          # <= 2048 lanes per tile
    units = 1
    for d in range(1, cap + 1):
        if n_units % d == 0:
            units = d
    return units * 128


def neg_pearson_loss(preds, labels):
    """Pallas implementation of Neg_Pearson.forward for (B, C, N) inputs."""
    preds = jnp.asarray(preds)
    labels = jnp.asarray(labels)
    B, C, N = preds.shape
    if C > 4:                       # PyTorch loop only touches channels 0..3
        preds = preds[:, :4, :]
        labels = labels[:, :4, :]
    R = B * 4

    # (B, 4, N) -> (B*4, N): contiguous, zero-cost reshape.
    x = preds.reshape(R, N)
    y = labels.reshape(R, N)

    # Zero-pad the time axis to a lane multiple; zeros do not change any of the
    # five accumulated statistics, and the Pearson formula uses the true N.
    n_pad = ((N + 127) // 128) * 128
    if n_pad != N:
        x = jnp.pad(x, ((0, 0), (0, n_pad - N)))
        y = jnp.pad(y, ((0, 0), (0, n_pad - N)))

    tile_r = _pick_row_tile(R)
    tile_n = _pick_time_tile(n_pad, tile_r, jnp.dtype(x.dtype).itemsize)
    grid = (R // tile_r, n_pad // tile_n)

    kernel = functools.partial(_neg_pearson_kernel, n_true=N, tile_n=tile_n)

    contrib = pl.pallas_call(
        kernel,
        out_shape=jax.ShapeDtypeStruct((R, 128), jnp.float32),
        grid=grid,
        in_specs=[
            pl.BlockSpec((tile_r, tile_n), lambda i, k: (i, k)),
            pl.BlockSpec((tile_r, tile_n), lambda i, k: (i, k)),
        ],
        # Lane-dense per-row output, resident across the time axis; fully
        # written on the last time tile of each row block.
        out_specs=pl.BlockSpec((tile_r, 128), lambda i, k: (i, 0)),
        scratch_shapes=[pltpu.VMEM((tile_r, 128), jnp.float32)
                        for _ in range(5)],
        compiler_params=pltpu.CompilerParams(
            dimension_semantics=("parallel", "arbitrary"),
            vmem_limit_bytes=32 * 1024 * 1024,
        ),
    )(x, y)

    # Every lane of a row carries that row's contribution, so the mean over the
    # (R, 128) slab equals sum(contrib_row) / (B * 4) — the module's loss.
    return jnp.mean(contrib)


def _reference(preds, labels):
    # Pure-JAX reference mirroring the PyTorch loop semantics.
    preds = jnp.asarray(preds, dtype=jnp.float32)[:, :4, :]
    labels = jnp.asarray(labels, dtype=jnp.float32)[:, :4, :]
    n = preds.shape[2]
    sum_x = jnp.sum(preds, axis=-1)
    sum_y = jnp.sum(labels, axis=-1)
    sum_xy = jnp.sum(preds * labels, axis=-1)
    sum_x2 = jnp.sum(preds ** 2, axis=-1)
    sum_y2 = jnp.sum(labels ** 2, axis=-1)
    p = (n * sum_xy - sum_x * sum_y) / jnp.sqrt(
        (n * sum_x2 - sum_x ** 2) * (n * sum_y2 - sum_y ** 2))
    contrib = jnp.where(p >= 0, 1 - p ** 2, 1 + p ** 2)
    return jnp.sum(contrib) / (preds.shape[0] * 4)


if __name__ == "__main__":
    key = jax.random.PRNGKey(0)
    k1, k2, k3, k4 = jax.random.split(key, 4)

    # Case 1: canonical shape (batch=2, 4 channels, 128 time steps).
    preds = jax.random.normal(k1, (2, 4, 128), dtype=jnp.float32)
    labels = jax.random.normal(k2, (2, 4, 128), dtype=jnp.float32)
    loss = jax.block_until_ready(neg_pearson_loss(preds, labels))
    ref = _reference(preds, labels)
    assert jnp.allclose(loss, ref, rtol=1e-5, atol=1e-5), (loss, ref)

    # Case 2: time length not a lane multiple + odd batch (exercises zero
    # padding and the full-extent row-block path).
    preds2 = jax.random.normal(k3, (3, 4, 200), dtype=jnp.float32)
    labels2 = jax.random.normal(k4, (3, 4, 200), dtype=jnp.float32)
    loss2 = jax.block_until_ready(neg_pearson_loss(preds2, labels2))
    ref2 = _reference(preds2, labels2)
    assert jnp.allclose(loss2, ref2, rtol=1e-5, atol=1e-5), (loss2, ref2)

    print("KERNEL_OK")
</pallas_src>

<mosaic_0001>
module attributes {stable_mosaic.version = 11 : i64} {
  func.func @_neg_pearson_kernel(%arg0: i32, %arg1: i32, %arg2: memref<8x128xf32, #tpu.memory_space<vmem>>, %arg3: memref<8x128xf32, #tpu.memory_space<vmem>>, %arg4: memref<8x128xf32, #tpu.memory_space<vmem>>, %arg5: memref<8x128xf32, #tpu.memory_space<vmem>>, %arg6: memref<8x128xf32, #tpu.memory_space<vmem>>, %arg7: memref<8x128xf32, #tpu.memory_space<vmem>>, %arg8: memref<8x128xf32, #tpu.memory_space<vmem>>, %arg9: memref<8x128xf32, #tpu.memory_space<vmem>>) attributes {dimension_semantics = [#tpu.dimension_semantics<parallel>, #tpu.dimension_semantics<arbitrary>], iteration_bounds = array<i64: 1, 1>, scalar_prefetch = 0 : i64, scratch_operands = 5 : i64, tpu.core_type = #tpu.core_type<tc>, window_params = [{transform_indices = @transform_0, window_bounds = array<i64: 8, 128>}, {transform_indices = @transform_1, window_bounds = array<i64: 8, 128>}, {transform_indices = @transform_2, window_bounds = array<i64: 8, 128>}]} {
    %c0_i32 = arith.constant 0 : i32
    %0 = arith.cmpi eq, %arg1, %c0_i32 : i32
    %1 = arith.extui %0 : i1 to i32
    %c0_i32_0 = arith.constant 0 : i32
    %2 = arith.cmpi ne, %1, %c0_i32_0 : i32
    scf.if %2 {
      %cst = arith.constant 0.000000e+00 : f32
      %26 = vector.broadcast %cst : f32 to vector<8x128xf32>
      %c0_26 = arith.constant 0 : index
      %c0_27 = arith.constant 0 : index
      %27 = vector.load %arg5[%c0_26, %c0_27] : memref<8x128xf32, #tpu.memory_space<vmem>>, vector<8x128xf32>
      tpu.vector_store %arg5[%c0_26, %c0_27], %26 {strides = array<i32>} : memref<8x128xf32, #tpu.memory_space<vmem>>, vector<8x128xf32>,
      %c0_28 = arith.constant 0 : index
      %c0_29 = arith.constant 0 : index
      %28 = vector.load %arg6[%c0_28, %c0_29] : memref<8x128xf32, #tpu.memory_space<vmem>>, vector<8x128xf32>
      tpu.vector_store %arg6[%c0_28, %c0_29], %26 {strides = array<i32>} : memref<8x128xf32, #tpu.memory_space<vmem>>, vector<8x128xf32>,
      %c0_30 = arith.constant 0 : index
      %c0_31 = arith.constant 0 : index
      %29 = vector.load %arg7[%c0_30, %c0_31] : memref<8x128xf32, #tpu.memory_space<vmem>>, vector<8x128xf32>
      tpu.vector_store %arg7[%c0_30, %c0_31], %26 {strides = array<i32>} : memref<8x128xf32, #tpu.memory_space<vmem>>, vector<8x128xf32>,
      %c0_32 = arith.constant 0 : index
      %c0_33 = arith.constant 0 : index
      %30 = vector.load %arg8[%c0_32, %c0_33] : memref<8x128xf32, #tpu.memory_space<vmem>>, vector<8x128xf32>
      tpu.vector_store %arg8[%c0_32, %c0_33], %26 {strides = array<i32>} : memref<8x128xf32, #tpu.memory_space<vmem>>, vector<8x128xf32>,
      %c0_34 = arith.constant 0 : index
      %c0_35 = arith.constant 0 : index
      %31 = vector.load %arg9[%c0_34, %c0_35] : memref<8x128xf32, #tpu.memory_space<vmem>>, vector<8x128xf32>
      tpu.vector_store %arg9[%c0_34, %c0_35], %26 {strides = array<i32>} : memref<8x128xf32, #tpu.memory_space<vmem>>, vector<8x128xf32>,
    } else {
    }
    %c0 = arith.constant 0 : index
    %c0_1 = arith.constant 0 : index
    %3 = vector.load %arg5[%c0, %c0_1] : memref<8x128xf32, #tpu.memory_space<vmem>>, vector<8x128xf32>
    %c0_2 = arith.constant 0 : index
    %c0_3 = arith.constant 0 : index
    %4 = vector.load %arg6[%c0_2, %c0_3] : memref<8x128xf32, #tpu.memory_space<vmem>>, vector<8x128xf32>
    %c0_4 = arith.constant 0 : index
    %c0_5 = arith.constant 0 : index
    %5 = vector.load %arg7[%c0_4, %c0_5] : memref<8x128xf32, #tpu.memory_space<vmem>>, vector<8x128xf32>
    %c0_6 = arith.constant 0 : index
    %c0_7 = arith.constant 0 : index
    %6 = vector.load %arg8[%c0_6, %c0_7] : memref<8x128xf32, #tpu.memory_space<vmem>>, vector<8x128xf32>
    %c0_8 = arith.constant 0 : index
    %c0_9 = arith.constant 0 : index
    %7 = vector.load %arg9[%c0_8, %c0_9] : memref<8x128xf32, #tpu.memory_space<vmem>>, vector<8x128xf32>
    %c0_10 = arith.constant 0 : index
    %c0_11 = arith.constant 0 : index
    %8 = vector.load %arg2[%c0_10, %c0_11] : memref<8x128xf32, #tpu.memory_space<vmem>>, vector<8x128xf32>
    %c0_12 = arith.constant 0 : index
    %c0_13 = arith.constant 0 : index
    %9 = vector.load %arg3[%c0_12, %c0_13] : memref<8x128xf32, #tpu.memory_space<vmem>>, vector<8x128xf32>
    %10 = arith.addf %3, %8 : vector<8x128xf32>
    %11 = arith.addf %4, %9 : vector<8x128xf32>
    %12 = arith.mulf %8, %9 : vector<8x128xf32>
    %13 = arith.addf %5, %12 : vector<8x128xf32>
    %14 = arith.mulf %8, %8 : vector<8x128xf32>
    %15 = arith.addf %6, %14 : vector<8x128xf32>
    %16 = arith.mulf %9, %9 : vector<8x128xf32>
    %17 = arith.addf %7, %16 : vector<8x128xf32>
    %c0_14 = arith.constant 0 : index
    %c0_15 = arith.constant 0 : index
    %18 = vector.load %arg5[%c0_14, %c0_15] : memref<8x128xf32, #tpu.memory_space<vmem>>, vector<8x128xf32>
    tpu.vector_store %arg5[%c0_14, %c0_15], %10 {strides = array<i32>} : memref<8x128xf32, #tpu.memory_space<vmem>>, vector<8x128xf32>,
    %c0_16 = arith.constant 0 : index
    %c0_17 = arith.constant 0 : index
    %19 = vector.load %arg6[%c0_16, %c0_17] : memref<8x128xf32, #tpu.memory_space<vmem>>, vector<8x128xf32>
    tpu.vector_store %arg6[%c0_16, %c0_17], %11 {strides = array<i32>} : memref<8x128xf32, #tpu.memory_space<vmem>>, vector<8x128xf32>,
    %c0_18 = arith.constant 0 : index
    %c0_19 = arith.constant 0 : index
    %20 = vector.load %arg7[%c0_18, %c0_19] : memref<8x128xf32, #tpu.memory_space<vmem>>, vector<8x128xf32>
    tpu.vector_store %arg7[%c0_18, %c0_19], %13 {strides = array<i32>} : memref<8x128xf32, #tpu.memory_space<vmem>>, vector<8x128xf32>,
    %c0_20 = arith.constant 0 : index
    %c0_21 = arith.constant 0 : index
    %21 = vector.load %arg8[%c0_20, %c0_21] : memref<8x128xf32, #tpu.memory_space<vmem>>, vector<8x128xf32>
    tpu.vector_store %arg8[%c0_20, %c0_21], %15 {strides = array<i32>} : memref<8x128xf32, #tpu.memory_space<vmem>>, vector<8x128xf32>,
    %c0_22 = arith.constant 0 : index
    %c0_23 = arith.constant 0 : index
    %22 = vector.load %arg9[%c0_22, %c0_23] : memref<8x128xf32, #tpu.memory_space<vmem>>, vector<8x128xf32>
    tpu.vector_store %arg9[%c0_22, %c0_23], %17 {strides = array<i32>} : memref<8x128xf32, #tpu.memory_space<vmem>>, vector<8x128xf32>,
    %c0_i32_24 = arith.constant 0 : i32
    %23 = arith.cmpi eq, %arg1, %c0_i32_24 : i32
    %24 = arith.extui %23 : i1 to i32
    %c0_i32_25 = arith.constant 0 : i32
    %25 = arith.cmpi ne, %24, %c0_i32_25 : i32
    scf.if %25 {
      %c0_26 = arith.constant 0 : index
      %c0_27 = arith.constant 0 : index
      %26 = vector.load %arg5[%c0_26, %c0_27] : memref<8x128xf32, #tpu.memory_space<vmem>>, vector<8x128xf32>
      %cst = arith.constant dense<0.000000e+00> : vector<8xf32>
      %27 = vector.multi_reduction <add>, %26, %cst [1] : vector<8x128xf32> to vector<8xf32>
      %28 = vector.shape_cast %27 : vector<8xf32> to vector<8x1xf32>
      %c0_28 = arith.constant 0 : index
      %c0_29 = arith.constant 0 : index
      %29 = vector.load %arg6[%c0_28, %c0_29] : memref<8x128xf32, #tpu.memory_space<vmem>>, vector<8x128xf32>
      %cst_30 = arith.constant dense<0.000000e+00> : vector<8xf32>
      %30 = vector.multi_reduction <add>, %29, %cst_30 [1] : vector<8x128xf32> to vector<8xf32>
      %31 = vector.shape_cast %30 : vector<8xf32> to vector<8x1xf32>
      %c0_31 = arith.constant 0 : index
      %c0_32 = arith.constant 0 : index
      %32 = vector.load %arg7[%c0_31, %c0_32] : memref<8x128xf32, #tpu.memory_space<vmem>>, vector<8x128xf32>
      %cst_33 = arith.constant dense<0.000000e+00> : vector<8xf32>
      %33 = vector.multi_reduction <add>, %32, %cst_33 [1] : vector<8x128xf32> to vector<8xf32>
      %34 = vector.shape_cast %33 : vector<8xf32> to vector<8x1xf32>
      %c0_34 = arith.constant 0 : index
      %c0_35 = arith.constant 0 : index
      %35 = vector.load %arg8[%c0_34, %c0_35] : memref<8x128xf32, #tpu.memory_space<vmem>>, vector<8x128xf32>
      %cst_36 = arith.constant dense<0.000000e+00> : vector<8xf32>
      %36 = vector.multi_reduction <add>, %35, %cst_36 [1] : vector<8x128xf32> to vector<8xf32>
      %37 = vector.shape_cast %36 : vector<8xf32> to vector<8x1xf32>
      %c0_37 = arith.constant 0 : index
      %c0_38 = arith.constant 0 : index
      %38 = vector.load %arg9[%c0_37, %c0_38] : memref<8x128xf32, #tpu.memory_space<vmem>>, vector<8x128xf32>
      %cst_39 = arith.constant dense<0.000000e+00> : vector<8xf32>
      %39 = vector.multi_reduction <add>, %38, %cst_39 [1] : vector<8x128xf32> to vector<8xf32>
      %40 = vector.shape_cast %39 : vector<8xf32> to vector<8x1xf32>
      %cst_40 = arith.constant 1.280000e+02 : f32
      %41 = vector.broadcast %cst_40 : f32 to vector<8x1xf32>
      %42 = arith.mulf %41, %34 : vector<8x1xf32>
      %43 = arith.mulf %28, %31 : vector<8x1xf32>
      %44 = arith.subf %42, %43 : vector<8x1xf32>
      %cst_41 = arith.constant 1.280000e+02 : f32
      %45 = vector.broadcast %cst_41 : f32 to vector<8x1xf32>
      %46 = arith.mulf %45, %37 : vector<8x1xf32>
      %47 = arith.mulf %28, %28 : vector<8x1xf32>
      %48 = arith.subf %46, %47 : vector<8x1xf32>
      %cst_42 = arith.constant 1.280000e+02 : f32
      %49 = vector.broadcast %cst_42 : f32 to vector<8x1xf32>
      %50 = arith.mulf %49, %40 : vector<8x1xf32>
      %51 = arith.mulf %31, %31 : vector<8x1xf32>
      %52 = arith.subf %50, %51 : vector<8x1xf32>
      %53 = arith.mulf %48, %52 : vector<8x1xf32>
      %54 = math.sqrt %53 : vector<8x1xf32>
      %55 = arith.divf %44, %54 : vector<8x1xf32>
      %56 = arith.mulf %55, %55 : vector<8x1xf32>
      %cst_43 = arith.constant 0.000000e+00 : f32
      %57 = vector.broadcast %cst_43 : f32 to vector<8x1xf32>
      %58 = arith.cmpf oge, %55, %57 : vector<8x1xf32>
      %cst_44 = arith.constant 1.000000e+00 : f32
      %59 = vector.broadcast %cst_44 : f32 to vector<8x1xf32>
      %60 = arith.subf %59, %56 : vector<8x1xf32>
      %cst_45 = arith.constant 1.000000e+00 : f32
      %61 = vector.broadcast %cst_45 : f32 to vector<8x1xf32>
      %62 = arith.addf %61, %56 : vector<8x1xf32>
      %63 = arith.select %58, %60, %62 : vector<8x1xi1>, vector<8x1xf32>
      %64 = vector.shape_cast %63 : vector<8x1xf32> to vector<8x1xf32>
      %65 = vector.broadcast %64 : vector<8x1xf32> to vector<8x128xf32>
      %c0_46 = arith.constant 0 : index
      %c0_47 = arith.constant 0 : index
      %66 = vector.load %arg4[%c0_46, %c0_47] : memref<8x128xf32, #tpu.memory_space<vmem>>, vector<8x128xf32>
      tpu.vector_store %arg4[%c0_46, %c0_47], %65 {strides = array<i32>} : memref<8x128xf32, #tpu.memory_space<vmem>>, vector<8x128xf32>,
    } else {
    }
    return
  }
  func.func @transform_0(%arg0: i32, %arg1: i32) -> (i32, i32) {
    %c0_i32 = arith.constant 0 : i32
    return %arg0, %arg1 : i32, i32
  }
  func.func @transform_1(%arg0: i32, %arg1: i32) -> (i32, i32) {
    %c0_i32 = arith.constant 0 : i32
    return %arg0, %arg1 : i32, i32
  }
  func.func @transform_2(%arg0: i32, %arg1: i32) -> (i32, i32) {
    %c0_i32 = arith.constant 0 : i32
    %c0_i32_0 = arith.constant 0 : i32
    return %arg0, %c0_i32 : i32, i32
  }
}

</mosaic_0001>

<bundles_post_ra>
// kernel: tpu_custom_call.1
= control target key start
LH: loop header
LB: loop body
LE: loop exit
PB: predicated region body
PF: predicated region fallthrough
CT: control target
= control target key end

     0   :  { %7 = vsyncpa [#allocation8], 0  ;;  %s224_s0 = inlined_call_operand.hbm [shape: f32[8,128], index: 0, kind: input, shape index: {}]   ;;  %s225_s1 = inlined_call_operand.hbm [shape: f32[8,128], index: 1, kind: input, shape index: {}]   ;;  %s226_s2 = inlined_call_operand.hbm [shape: f32[8,128], index: 2, kind: output, shape index: {}]  }
   0x1   :  { %8 = vsyncpa [#allocation11], 0 }
   0x2   :  { %9 = vsyncpa [#allocation9], 0  ;;  %s197_s9 = smov [#allocation7]   ;;  %s198_s11 = smov [#allocation10]  }
   0x3   :  { %s16_s10 = sshll.u32 %s197_s9, 4  ;;  %s26_s12 = sshll.u32 %s198_s11, 4  ;;  %s17_s10 = int_to_ptr.vmem [resolvable:$true] %s16_s10  ;;  %s27_s12 = int_to_ptr.vmem [resolvable:$true] %s26_s12 }
   0x4   :  { %s139_s13 = scalar_lea.vmem %s17_s10, 128  ;;  %p144_p1 = scmp.lt.s32.totalorder %s17_s10, %s17_s10 }
   0x5   :  { %p140_p0 = scmp.ne.s32.totalorder %s17_s10, %s139_s13  ;;  %p145_p2 = scmp.lt.s32.totalorder %s139_s13, %s139_s13 }
   0x7   :  { %p146_p3 = por %p145_p2, %p144_p1 }
   0x9   :  { %p147_p4 = pnand %p146_p3, %p140_p0 }
   0xb   :  { %150 = shalt.err (!%p147_p4)
}
   0xc   :  { %19 = dma.hbm_to_vmem [thread:$0]  %s224_s0, 128, %s17_s10, [#allocation8]  }
   0xd   :  { %s159_s16 = scalar_lea.vmem %s27_s12, 128  ;;  %p164_p6 = scmp.lt.s32.totalorder %s27_s12, %s27_s12 }
   0xe   :  { %p160_p5 = scmp.ne.s32.totalorder %s27_s12, %s159_s16  ;;  %p165_p7 = scmp.lt.s32.totalorder %s159_s16, %s159_s16 }
  0x10   :  { %p166_p8 = por %p165_p7, %p164_p6 }
  0x12   :  { %p167_p9 = pnand %p166_p8, %p160_p5 }
  0x14   :  { %170 = shalt.err (!%p167_p9)
}
  0x15   :  { %29 = dma.hbm_to_vmem [thread:$0]  %s225_s1, 128, %s27_s12, [#allocation11]  }
  0x16   :  { %191 = dma.done.wait [#allocation8], 128  }
  0x17   :  { %192 = vsyncadd [#allocation8], 4294967168 }
  0x18   :  { %193 = dma.done.wait [#allocation11], 128  }
  0x19   :  { %194 = vsyncadd [#allocation11], 4294967168  ;;  %v50_v0 = vld [vmem:[#allocation7] sm:$0xff]  ;;  %v51_v1 = vld [vmem:[#allocation10] sm:$0xff]  ;;  %s199_s0 = smov [#allocation12]  }
  0x1a   :  { %69 = vadd.xlane.f32.xlu0 %v50_v0  ;;  %v56_v2 = vmul.f32 %v50_v0, %v50_v0  ;;  %v58_v3 = vmul.f32 %v51_v1, %v51_v1  ;;  %v54_v4 = vmul.f32 %v51_v1, %v50_v0  ;;  %s114_s1 = sshll.u32 %s199_s0, 4  ;;  %s115_s1 = int_to_ptr.vmem [resolvable:$true] %s114_s1 }
  0x1b   :  { %s171_s19 = scalar_lea.vmem %s115_s1, 128  ;;  %p176_p11 = scmp.lt.s32.totalorder %s115_s1, %s115_s1 }
  0x1c   :  { %78 = vadd.xlane.f32.xlu1 %v56_v2  ;;  %p172_p10 = scmp.ne.s32.totalorder %s115_s1, %s171_s19  ;;  %p177_p12 = scmp.lt.s32.totalorder %s171_s19, %s171_s19 }
  0x1e   :  { %72 = vadd.xlane.f32.xlu0 %v51_v1  ;;  %p178_p13 = por %p177_p12, %p176_p11 }
  0x20   :  { %81 = vadd.xlane.f32.xlu1 %v58_v3  ;;  %p179_p0 = pnand %p178_p13, %p172_p10 }
  0x22   :  { %75 = vadd.xlane.f32.xlu0 %v54_v4 }
  0xa3   :  { %v70_v5 = vpop.xlane.xlu0 %69 }
  0xa4   :  { %v87_v8 = vmul.f32 %v70_v5, %v70_v5 }
  0xa5   :  { %v79_v6 = vpop.xlane.xlu1 %78 }
  0xa6   :  { %v86_v9 = vmul.f32 128.0, %v79_v6 }
  0xa7   :  { %v73_v7 = vpop.xlane.xlu0 %72 }
  0xa8   :  { %v90_v10 = vmul.f32 %v73_v7, %v73_v7  ;;  %v88_v13 = vsub.f32 %v86_v9, %v87_v8  ;;  %v84_v23 = vmul.f32 %v73_v7, %v70_v5 }
  0xa9   :  { %v82_v11 = vpop.xlane.xlu1 %81 }
  0xaa   :  { %v89_v12 = vmul.f32 128.0, %v82_v11 }
  0xab   :  { %v76_v21 = vpop.xlane.xlu0 %75 }
  0xac   :  { %v91_v14 = vsub.f32 %v89_v12, %v90_v10  ;;  %v83_v22 = vmul.f32 128.0, %v76_v21 }
  0xae   :  { %v92_v15 = vmul.f32 %v91_v14, %v88_v13  ;;  %v85_v24 = vsub.f32 %v83_v22, %v84_v23 }
  0xb0   :  { %127 = vrsqrt.f32 %v92_v15  ;;  %vm95_vm0 = vcmp.eq.f32.partialorder %v92_v15, inf  ;;  %v98_v18 = vand.u32 2147483648, %v92_v15  ;;  %vm97_vm1 = vcmp.eq.f32.partialorder %v92_v15, 0.0 }
  0xbd   :  { %v128_v16 = vpop.eup %127 }
  0xbe   :  { %v94_v17 = vmul.f32 %v128_v16, %v92_v15 }
  0xc0   :  { %v96_v19 = vsel %vm95_vm0, %v92_v15, %v94_v17 }
  0xc1   :  { %v99_v20 = vsel %vm97_vm1, %v98_v18, %v96_v19 }
  0xc2   :  { %129 = vrcp.f32 %v99_v20 }
  0xcf   :  { %v130_v25 = vpop.eup %129 }
  0xd0   :  { %v101_v26 = vmul.f32 %v130_v25, %v85_v24 }
  0xd2   :  { %v102_v27 = vmul.f32 %v101_v26, %v101_v26  ;;  %vm103_vm2 = vcmp.ge.f32.partialorder %v101_v26, 0.0 }
  0xd4   :  { %v104_v28 = vsub.f32 1.0, %v102_v27  ;;  %v105_v29 = vadd.f32 1.0, %v102_v27 }
  0xd6   :  { %v106_v30 = vsel %vm103_vm2, %v104_v28, %v105_v29 }
  0xd7   :  { %107 = vst [vmem:[#allocation12] sm:$0xff] %v106_v30 }
  0xd8   :  { %182 = shalt.err (!%p179_p0)
}
  0xd9   :  { %117 = dma.vmem_to_hbm [thread:$0]  %s115_s1, 128, %s226_s2, [#allocation9]  }
  0xda   :  { %195 = dma.done.wait [#allocation9], 128  }
  0xdb   :  { %196 = vsyncadd [#allocation9], 4294967168 }
  0xdc   :  { %121 = vsyncpa [#allocation8], 1 }
  0xdd   :  { %122 = vsyncpa [#allocation11], 1 }
  0xde   :  { %123 = vsyncpa [#allocation9], 1 }

</bundles_post_ra>
